<compile_context>
chip_gen: v7x
topology: tpu7x:2x2x1
jax: 0.10.0
libtpu: 0.0.40
codegen_flags: <defaults>
</compile_context>

<pallas_src>
import jax
import jax.numpy as jnp
from jax import lax
from jax.experimental import pallas as pl
from jax.experimental.pallas import tpu as pltpu


def _ccbn_stats_kernel(x_ref, sum_ref, sumsq_ref, sum_sc, sumsq_sc):
    """Per-channel sum / sum-of-squares over (B, HW), native NCHW layout.

    x_ref   : (1, ct, hwt) block of the (B, C, HW) view (channels on sublanes,
              HW on lanes)
    sum_ref, sumsq_ref : (ct, 1) outputs, written on the final reduction step only
    sum_sc, sumsq_sc   : (ct, hwt) f32 VMEM accumulators (lane reduce deferred to
                          finalize so the hot loop is pure VALU)
    """
    b = pl.program_id(1)
    s = pl.program_id(2)

    @pl.when(jnp.logical_and(b == 0, s == 0))
    def _init():
        sum_sc[...] = jnp.zeros_like(sum_sc)
        sumsq_sc[...] = jnp.zeros_like(sumsq_sc)

    xb = x_ref[0].astype(jnp.float32)          # (ct, hwt), f32 accumulation
    sum_sc[...] += xb
    sumsq_sc[...] += xb * xb

    @pl.when(jnp.logical_and(b == pl.num_programs(1) - 1,
                             s == pl.num_programs(2) - 1))
    def _finalize():
        sum_ref[...] = jnp.sum(sum_sc[...], axis=1, keepdims=True)      # (ct, 1)
        sumsq_ref[...] = jnp.sum(sumsq_sc[...], axis=1, keepdims=True)  # (ct, 1)


def _ccbn_apply_kernel(x_ref, scale_ref, shift_ref, out_ref):
    """out = x * scale + shift, native NCHW.

    x_ref/out_ref      : (1, ct, hwt)
    scale_ref/shift_ref: (1, ct, 1), lane-broadcast over the spatial block
    """
    out_ref[...] = (x_ref[...] * scale_ref[...] + shift_ref[...]).astype(out_ref.dtype)


def _pick_block(extent, target, granule):
    """Largest divisor of `extent` that is <= target and a multiple of `granule`.

    Falls back to the full extent (always a legal block) if none exists.
    """
    t = max(1, min(int(target), int(extent)))
    for d in range(t, granule - 1, -1):
        if extent % d == 0 and d % granule == 0:
            return d
    return extent


def class_conditional_batchnorm(x, y, wg, bg, wb, bb, eps=1e-5,
                                c_block=256, hw_block=2048):
    """x: (B, C, H, W) NCHW, y: (B, Z).

    Linear weights stored transposed vs torch: wg/wb are (Z, C), bg/bb are (C,).
    """
    B, C, H, W = x.shape
    HW = H * W
    N = B * HW

    # Channel tile on sublanes (granule 8), capped at C//2 so the stats pass keeps
    # at least 2 parallel channel blocks (megacore on v7x).  Spatial tile on lanes
    # (granule 128) for lane-dense streaming.
    ct = _pick_block(C, min(c_block, max(8, C // 2)), 8)
    hwt = _pick_block(HW, hw_block, 128)
    n_cb = C // ct
    n_sb = HW // hwt

    x3 = x.reshape(B, C, HW)          # free reshape: NCHW is already channel-major

    vmem_limit = 48 * 1024 * 1024

    # ---- Pass 1: per-channel sum / sum-of-squares (the only full-tensor reduce) ---
    x_sum, x_sumsq = pl.pallas_call(
        _ccbn_stats_kernel,
        grid=(n_cb, B, n_sb),
        in_specs=[
            pl.BlockSpec((1, ct, hwt), lambda c, b, s: (b, c, s)),
        ],
        out_specs=[
            pl.BlockSpec((ct, 1), lambda c, b, s: (c, 0)),   # resident over (b, s)
            pl.BlockSpec((ct, 1), lambda c, b, s: (c, 0)),
        ],
        out_shape=[
            jax.ShapeDtypeStruct((C, 1), jnp.float32),
            jax.ShapeDtypeStruct((C, 1), jnp.float32),
        ],
        scratch_shapes=[
            pltpu.VMEM((ct, hwt), jnp.float32),              # sum(x)
            pltpu.VMEM((ct, hwt), jnp.float32),              # sum(x*x)
        ],
        compiler_params=pltpu.CompilerParams(
            dimension_semantics=("parallel", "arbitrary", "arbitrary"),
            vmem_limit_bytes=vmem_limit),
        cost_estimate=pl.CostEstimate(
            flops=int(3 * N * C),
            transcendentals=0,
            bytes_accessed=int(x.dtype.itemsize * N * C + 4 * 2 * C)),
    )(x3)

    # ---- Tiny O(B*C) fold in XLA (per perf review): linears + scale/shift -------
    inv_n = 1.0 / float(N)
    mean = x_sum[:, 0] * inv_n                                   # (C,)
    var = jnp.maximum(x_sumsq[:, 0] * inv_n - mean * mean, 0.0)  # biased, clamped
    inv = lax.rsqrt(var + eps)                                   # (C,)

    gain = 1.0 + (y @ wg + bg)                                   # (B, C)
    bias = y @ wb + bb                                           # (B, C)
    scale = gain * inv[None, :]                                  # (B, C)
    shift = bias - mean[None, :] * scale                         # (B, C)
    scale3 = scale.astype(jnp.float32).reshape(B, C, 1)
    shift3 = shift.astype(jnp.float32).reshape(B, C, 1)

    # ---- Pass 2: out = x * scale + shift, fully parallel, batch-independent tiles
    out3 = pl.pallas_call(
        _ccbn_apply_kernel,
        grid=(B, n_cb, n_sb),
        in_specs=[
            pl.BlockSpec((1, ct, hwt), lambda b, c, s: (b, c, s)),
            pl.BlockSpec((1, ct, 1), lambda b, c, s: (b, c, 0)),
            pl.BlockSpec((1, ct, 1), lambda b, c, s: (b, c, 0)),
        ],
        out_specs=pl.BlockSpec((1, ct, hwt), lambda b, c, s: (b, c, s)),
        out_shape=jax.ShapeDtypeStruct((B, C, HW), x.dtype),
        compiler_params=pltpu.CompilerParams(
            dimension_semantics=("parallel", "parallel", "parallel"),
            vmem_limit_bytes=vmem_limit),
        cost_estimate=pl.CostEstimate(
            flops=int(2 * B * C * HW),
            transcendentals=0,
            bytes_accessed=int(x.dtype.itemsize * 2 * B * C * HW + 4 * 2 * B * C)),
    )(x3, scale3, shift3)

    return out3.reshape(B, C, H, W)


def _reference(x, y, wg, bg, wb, bb, eps=1e-5):
    gain = 1.0 + (y @ wg + bg)[:, :, None, None]
    bias = (y @ wb + bb)[:, :, None, None]
    mean = jnp.mean(x, axis=(0, 2, 3), keepdims=True)
    var = jnp.mean((x - mean) ** 2, axis=(0, 2, 3), keepdims=True)
    out = (x - mean) * lax.rsqrt(var + eps)
    return out * gain + bias


if __name__ == "__main__":
    # Small but non-degenerate shapes: C=256 -> ct=128 gives a 2-wide parallel
    # channel grid; HW=256 is a single lane-dense 128-multiple spatial block.
    B, C, Z, H, W = 2, 256, 32, 16, 16

    key = jax.random.PRNGKey(0)
    kx, ky, k1, k2, k3, k4 = jax.random.split(key, 6)

    x = jax.random.normal(kx, (B, C, H, W), dtype=jnp.float32)
    y = jax.random.normal(ky, (B, Z), dtype=jnp.float32)

    # Deterministic "Linear" parameters: torch weight (C, Z) stored transposed (Z, C).
    wg = 0.1 * jax.random.normal(k1, (Z, C), dtype=jnp.float32)
    bg = 0.1 * jax.random.normal(k2, (C,), dtype=jnp.float32)
    wb = 0.1 * jax.random.normal(k3, (Z, C), dtype=jnp.float32)
    bb = 0.1 * jax.random.normal(k4, (C,), dtype=jnp.float32)

    out = class_conditional_batchnorm(x, y, wg, bg, wb, bb)
    out = jax.block_until_ready(out)

    ref = _reference(x, y, wg, bg, wb, bb)
    assert out.shape == (B, C, H, W)
    max_err = float(jnp.max(jnp.abs(out - ref)))
    assert jnp.allclose(out, ref, atol=1e-4, rtol=1e-4), f"mismatch vs reference: {max_err}"

    print("KERNEL_OK")
</pallas_src>

<mosaic_0001>
module attributes {stable_mosaic.version = 11 : i64} {
  func.func @_ccbn_stats_kernel(%arg0: i32, %arg1: i32, %arg2: i32, %arg3: memref<1x128x256xf32, #tpu.memory_space<vmem>>, %arg4: memref<128x1xf32, #tpu.memory_space<vmem>>, %arg5: memref<128x1xf32, #tpu.memory_space<vmem>>, %arg6: memref<128x256xf32, #tpu.memory_space<vmem>>, %arg7: memref<128x256xf32, #tpu.memory_space<vmem>>) attributes {dimension_semantics = [#tpu.dimension_semantics<parallel>, #tpu.dimension_semantics<arbitrary>, #tpu.dimension_semantics<arbitrary>], iteration_bounds = array<i64: 2, 2, 1>, scalar_prefetch = 0 : i64, scratch_operands = 2 : i64, tpu.core_type = #tpu.core_type<tc>, window_params = [{transform_indices = @transform_0, window_bounds = array<i64: 1, 128, 256>}, {transform_indices = @transform_1, window_bounds = array<i64: 128, 1>}, {transform_indices = @transform_2, window_bounds = array<i64: 128, 1>}]} {
    %c0_i32 = arith.constant 0 : i32
    %0 = arith.cmpi eq, %arg1, %c0_i32 : i32
    %c0_i32_0 = arith.constant 0 : i32
    %1 = arith.cmpi eq, %arg2, %c0_i32_0 : i32
    %2 = arith.andi %0, %1 : i1
    %3 = arith.extui %2 : i1 to i32
    %c0_i32_1 = arith.constant 0 : i32
    %4 = arith.cmpi ne, %3, %c0_i32_1 : i32
    scf.if %4 {
      %cst = arith.constant 0.000000e+00 : f32
      %19 = vector.broadcast %cst : f32 to vector<128x256xf32>
      %c0_14 = arith.constant 0 : index
      %c0_15 = arith.constant 0 : index
      %20 = vector.load %arg6[%c0_14, %c0_15] : memref<128x256xf32, #tpu.memory_space<vmem>>, vector<128x256xf32>
      tpu.vector_store %arg6[%c0_14, %c0_15], %19 {strides = array<i32>} : memref<128x256xf32, #tpu.memory_space<vmem>>, vector<128x256xf32>,
      %cst_16 = arith.constant 0.000000e+00 : f32
      %21 = vector.broadcast %cst_16 : f32 to vector<128x256xf32>
      %c0_17 = arith.constant 0 : index
      %c0_18 = arith.constant 0 : index
      %22 = vector.load %arg7[%c0_17, %c0_18] : memref<128x256xf32, #tpu.memory_space<vmem>>, vector<128x256xf32>
      tpu.vector_store %arg7[%c0_17, %c0_18], %21 {strides = array<i32>} : memref<128x256xf32, #tpu.memory_space<vmem>>, vector<128x256xf32>,
    } else {
    }
    %c0 = arith.constant 0 : index
    %c0_2 = arith.constant 0 : index
    %c0_3 = arith.constant 0 : index
    %5 = vector.load %arg3[%c0, %c0_2, %c0_3] : memref<1x128x256xf32, #tpu.memory_space<vmem>>, vector<1x128x256xf32>
    %6 = vector.shape_cast %5 : vector<1x128x256xf32> to vector<128x256xf32>
    %c0_4 = arith.constant 0 : index
    %c0_5 = arith.constant 0 : index
    %7 = vector.load %arg6[%c0_4, %c0_5] : memref<128x256xf32, #tpu.memory_space<vmem>>, vector<128x256xf32>
    %8 = arith.addf %7, %6 : vector<128x256xf32>
    %c0_6 = arith.constant 0 : index
    %c0_7 = arith.constant 0 : index
    %9 = vector.load %arg6[%c0_6, %c0_7] : memref<128x256xf32, #tpu.memory_space<vmem>>, vector<128x256xf32>
    tpu.vector_store %arg6[%c0_6, %c0_7], %8 {strides = array<i32>} : memref<128x256xf32, #tpu.memory_space<vmem>>, vector<128x256xf32>,
    %c0_8 = arith.constant 0 : index
    %c0_9 = arith.constant 0 : index
    %10 = vector.load %arg7[%c0_8, %c0_9] : memref<128x256xf32, #tpu.memory_space<vmem>>, vector<128x256xf32>
    %11 = arith.mulf %6, %6 : vector<128x256xf32>
    %12 = arith.addf %10, %11 : vector<128x256xf32>
    %c0_10 = arith.constant 0 : index
    %c0_11 = arith.constant 0 : index
    %13 = vector.load %arg7[%c0_10, %c0_11] : memref<128x256xf32, #tpu.memory_space<vmem>>, vector<128x256xf32>
    tpu.vector_store %arg7[%c0_10, %c0_11], %12 {strides = array<i32>} : memref<128x256xf32, #tpu.memory_space<vmem>>, vector<128x256xf32>,
    %c1_i32 = arith.constant 1 : i32
    %14 = arith.cmpi eq, %arg1, %c1_i32 : i32
    %c0_i32_12 = arith.constant 0 : i32
    %15 = arith.cmpi eq, %arg2, %c0_i32_12 : i32
    %16 = arith.andi %14, %15 : i1
    %17 = arith.extui %16 : i1 to i32
    %c0_i32_13 = arith.constant 0 : i32
    %18 = arith.cmpi ne, %17, %c0_i32_13 : i32
    scf.if %18 {
      %c0_14 = arith.constant 0 : index
      %c0_15 = arith.constant 0 : index
      %19 = vector.load %arg6[%c0_14, %c0_15] : memref<128x256xf32, #tpu.memory_space<vmem>>, vector<128x256xf32>
      %cst = arith.constant dense<0.000000e+00> : vector<128xf32>
      %20 = vector.multi_reduction <add>, %19, %cst [1] : vector<128x256xf32> to vector<128xf32>
      %21 = vector.shape_cast %20 : vector<128xf32> to vector<128x1xf32>
      %c0_16 = arith.constant 0 : index
      %c0_17 = arith.constant 0 : index
      %22 = vector.load %arg4[%c0_16, %c0_17] : memref<128x1xf32, #tpu.memory_space<vmem>>, vector<128x1xf32>
      tpu.vector_store %arg4[%c0_16, %c0_17], %21 {strides = array<i32>} : memref<128x1xf32, #tpu.memory_space<vmem>>, vector<128x1xf32>,
      %c0_18 = arith.constant 0 : index
      %c0_19 = arith.constant 0 : index
      %23 = vector.load %arg7[%c0_18, %c0_19] : memref<128x256xf32, #tpu.memory_space<vmem>>, vector<128x256xf32>
      %cst_20 = arith.constant dense<0.000000e+00> : vector<128xf32>
      %24 = vector.multi_reduction <add>, %23, %cst_20 [1] : vector<128x256xf32> to vector<128xf32>
      %25 = vector.shape_cast %24 : vector<128xf32> to vector<128x1xf32>
      %c0_21 = arith.constant 0 : index
      %c0_22 = arith.constant 0 : index
      %26 = vector.load %arg5[%c0_21, %c0_22] : memref<128x1xf32, #tpu.memory_space<vmem>>, vector<128x1xf32>
      tpu.vector_store %arg5[%c0_21, %c0_22], %25 {strides = array<i32>} : memref<128x1xf32, #tpu.memory_space<vmem>>, vector<128x1xf32>,
    } else {
    }
    return
  }
  func.func @transform_0(%arg0: i32, %arg1: i32, %arg2: i32) -> (i32, i32, i32) {
    %c0_i32 = arith.constant 0 : i32
    return %arg1, %arg0, %arg2 : i32, i32, i32
  }
  func.func @transform_1(%arg0: i32, %arg1: i32, %arg2: i32) -> (i32, i32) {
    %c0_i32 = arith.constant 0 : i32
    %c0_i32_0 = arith.constant 0 : i32
    return %arg0, %c0_i32 : i32, i32
  }
  func.func @transform_2(%arg0: i32, %arg1: i32, %arg2: i32) -> (i32, i32) {
    %c0_i32 = arith.constant 0 : i32
    %c0_i32_0 = arith.constant 0 : i32
    return %arg0, %c0_i32 : i32, i32
  }
}

</mosaic_0001>

<bundles_post_ra>
// kernel: tpu_custom_call.1
= control target key start
LH: loop header
LB: loop body
LE: loop exit
PB: predicated region body
PF: predicated region fallthrough
CT: control target
= control target key end

     0   :  { %8 = vsyncpa [#allocation5], 0  ;;  %s1584_s0 = inlined_call_operand.hbm [shape: f32[2,256,256], index: 0, kind: input, shape index: {}]   ;;  %s1585_s1 = inlined_call_operand.vmem [shape: f32[256,1], index: 1, kind: output, shape index: {0}]   ;;  %s1586_s2 = inlined_call_operand.vmem [shape: f32[256,1], index: 2, kind: output, shape index: {1}]  }
   0x1   :  { %10 = vsyncpa [#allocation5 + $0x1], 0  ;;  %s1067_s9 = smov 0   ;;  %s1069_s10 = smov 0  }
   0x2   :  { %s1071_s11 = smov 0   ;;  %s1073_s12 = smov 0  }
   0x3   :  { %s1075_s13 = smov 0   ;;  %s1077_s14 = smov 0  }
   0x4   :  { %s1079_s15 = smov 0   ;;  %s1081_s16 = smov 0  }
   0x5 LB: > { %s854_s17 = sadd.s32 4294967295, %s1046_s16   ;;  %s31_s18 = sadd.s32 1, %s1038_s14  ;;  %s1046_s16 = sphi %s1081_s16, %s16_s16   ;;  %s1042_s15 = sphi %s1079_s15, %s1597_s15   ;;  %s1038_s14 = sphi %s1077_s14, %s1596_s14   ;;  %s1034_s13 = sphi %s1075_s13, %s1595_s13   ;;  %s1030_s12 = sphi %s1073_s12, %s1594_s12   ;;  %s1026_s11 = sphi %s1071_s11, %s1593_s11   ;;  %s1022_s10 = sphi %s1069_s10, %s1592_s10   ;;  %s1018_s9 = sphi %s1067_s9, %s1591_s9  }
   0x6   : > { %p33_p0 = scmp.ge.s32.totalorder %s31_s18, 2  ;;  %s35_s19 = sadd.s32 1, %s1042_s15 }
   0x7   : > { %s46_s20 = sadd.s32 1, %s1026_s11  ;;  %p53_p1 = scmp.ne.s32.totalorder %s1026_s11, %s1022_s10 }
   0x8   : > { %s1599_s18 = smov (%p33_p0, %s31_s18), 0  ;;  %s1601_s19 = smov (!%p33_p0, %s35_s19), %s1042_s15 }
   0x9   : > { %s39_s21 = ssub.s32 %s1038_s14, %s1599_s18  ;;  %p54_p2 = scmp.eq.s32.totalorder %s1046_s16, 0 }
   0xa   : > { %p37_p3 = scmp.ge.s32.totalorder %s1601_s19, 2  ;;  %p59_p4 = scmp.ne.s32.totalorder %s1022_s10, %s1018_s9 }
   0xb   : > { %p1118_p5 = por %p54_p2, %p53_p1  ;;  %p60_p6 = scmp.eq.s32.totalorder %s854_s17, 0 }
   0xc   : > { %s1603_s19 = smov (%p37_p3, %s1601_s19), 0  ;;  %p882_p8 = scmp.lt.s32.totalorder %s1046_s16, 4 }
   0xd   : > { %p1124_p7 = por %p60_p6, %p59_p4  ;;  %s40_s24 = ssub.s32 %s1042_s15, %s1603_s19 }
   0xe   : > { %s41_s25 = sor.u32 %s40_s24, %s39_s21  ;;  %s135_s26 = sand.u32 1, %s1026_s11  }
   0xf   : > { %p44_p9 = scmp.eq.s32.totalorder %s41_s25, 0  ;;  %s858_s27 = sshll.u32 %s135_s26, 8 }
  0x10   : > { %s873_s28 = sshll.u32 %s1042_s15, 5  ;;  %s861_s30 = sshll.u32 %s1038_s14, 6 }
  0x11   : > { %s1134_s29 = scalar_select %p44_p9, %s1026_s11, %s46_s20  }
  0x12   : > { %s148_s3 = sadd.s32 %s873_s28, %s861_s30  ;;  %s139_s4 = scalar_lea.vmem [#allocation4], %s858_s27 }
  0x13   : > { %s151_s5 = sshll.u32 %s139_s4, 4  ;;  %s862_s6 = sshll.u32 %s148_s3, 7  ;;  %s1137_s5 = int_to_ptr.vmem [resolvable:$true] %s151_s5 }
  0x14   : > { %s1142_s9 = scalar_lea.hbm %s1584_s0, %s862_s6  ;;  %p1148_p10 = pnand %p882_p8, %p1118_p5 }
  0x15   : > { %s1153_s20 = scalar_lea.sflag [#allocation5], %s135_s26  ;;  %s950_s21 = scalar_lea.hbm %s1142_s9, 4096 }
  0x16   : > { %p951_p12 = scmp.ne.s32.totalorder %s1142_s9, %s950_s21  ;;  %p952_p13 = pneg %p1148_p10 }
  0x17   : > { %s955_s25 = scalar_lea.hbm %s1584_s0, 16384  ;;  %p956_p2 = scmp.lt.u32.totalorder %s1142_s9, %s1584_s0 }
  0x18   : > { %p953_p0 = pnand %p952_p13, %p951_p12  ;;  %p957_p3 = scmp.lt.u32.totalorder %s955_s25, %s950_s21 }
  0x19   : > { %p959_p5 = scmp.lt.u32.totalorder %s950_s21, %s1142_s9 }
  0x1a   : > { %p954_p1 = pneg %p953_p0  ;;  %p958_p4 = por %p957_p3, %p956_p2 }
  0x1c   : > { %p960_p6 = por %p959_p5, %p958_p4 }
  0x1e   : > { %p961_p8 = pnand %p960_p6, %p954_p1 }
  0x20   : > { %964 = shalt.err (!%p961_p8)
}
  0x21   : > { %s965_s26 = scalar_lea.vmem %s1137_s5, 4096  ;;  %s1048_s30 = smov [#allocation4]  }
  0x22   : > { %p966_p9 = scmp.ne.s32.totalorder %s1137_s5, %s965_s26  ;;  %s970_s3 = sshll.u32 %s1048_s30, 4  ;;  %s971_s3 = int_to_ptr.vmem [resolvable:$false] %s970_s3 }
  0x23   : > { %s972_s4 = scalar_lea.vmem %s971_s3, 8192  ;;  %p973_p11 = scmp.lt.s32.totalorder %s1137_s5, %s971_s3 }
  0x24   : > { %p968_p12 = pnand %p966_p9, %p952_p13  ;;  %p974_p2 = scmp.lt.s32.totalorder %s972_s4, %s965_s26 }
  0x26   : > { %p969_p0 = pneg %p968_p12  ;;  %p975_p3 = por %p974_p2, %p973_p11 }
  0x28   : > { %p976_p4 = pnand %p975_p3, %p969_p0 }
  0x2a   : > { %979 = shalt.err (!%p976_p4)
}
  0x2b   : > { %s1049_s6 = smov 256   ;;  %s1050_s7 = smov 16  }
  0x2c   : > { %881 = dma.hbm_to_vmem [thread:$0]  (!%p1148_p10), %s1142_s9, 4096, %s1137_s5, %s1153_s20, %s1049_s6, %s1049_s6, %s1050_s7  }
  0x2d   : > { %p159_p13 = scmp.lt.s32.totalorder %s1046_s16, 5  ;;  %p1590_p1 = scmp.ge.s32.totalorder %s1046_s16, 1 }
  0x2f   : > { %p160_p5 = pnand %p1590_p1, %p159_p13 }
  0x30   : > { %s165_s8 = sand.u32 (!%p160_p5), 1, %s1022_s10  }
  0x31   : > { %163 = sbr.rel (%p160_p5) target bundleno = 338 (0x152), region = 24  ;;  %s864_s21 = sshll.u32 (!%p160_p5), %s165_s8, 8 }
  0x32   : > { %s166_s22 = scalar_lea.sflag (!%p160_p5), [#allocation5], %s165_s8  ;;  %s1185_s24 = scalar_lea.vmem (!%p160_p5), [#allocation4], %s864_s21 }
  0x38   : > { %1013 = dma.done.wait (%p1124_p7), %s166_s22, 4096  }
  0x39   : > { %1015 = vsyncadd (%p1124_p7), %s166_s22, 4294963200  ;;  %s865_s17 = sshll.u32 %s1034_s13, 4  ;;  %p209_p10 = scmp.eq.s32.totalorder %s1030_s12, 0 }
  0x3a   : > { %p198_p11 = scmp.lt.s32.totalorder %s865_s17, 31  ;;  %v1051_v0 = vmov (%p209_p10), 0.0  }
  0x3b   : > { %214 = sbr.rel (!%p209_p10) target bundleno = 91 (0x5b), region = 32  ;;  %215 = vst [vmem:[#allocation2] sm:$0xff] (%p209_p10), %v1051_v0  ;;  %216 = vst [vmem:[#allocation2 + $0x8] sm:$0xff] (%p209_p10), %v1051_v0 }
  0x3c   : > { %s1605_s17 = smov (!%p198_p11, %s865_s17), 31  ;;  %217 = vst [vmem:[#allocation2 + $0x10] sm:$0xff] (%p209_p10), %v1051_v0  ;;  %218 = vst [vmem:[#allocation2 + $0x18] sm:$0xff] (%p209_p10), %v1051_v0 }
  0x3d   : > { %s866_s5 = sshll.u32 %s1605_s17, 3  ;;  %219 = vst [vmem:[#allocation2 + $0x20] sm:$0xff] (%p209_p10), %v1051_v0  ;;  %220 = vst [vmem:[#allocation2 + $0x28] sm:$0xff] (%p209_p10), %v1051_v0 }
  0x3e   : > { %s1196_s25 = scalar_lea.vmem %s1585_s1, %s866_s5  ;;  %s1201_s26 = scalar_lea.vmem %s1586_s2, %s866_s5  ;;  %221 = vst [vmem:[#allocation2 + $0x30] sm:$0xff] (%p209_p10), %v1051_v0  ;;  %222 = vst [vmem:[#allocation2 + $0x38] sm:$0xff] (%p209_p10), %v1051_v0 }
  0x3f   : > { %223 = vst [vmem:[#allocation2 + $0x40] sm:$0xff] (%p209_p10), %v1051_v0  ;;  %224 = vst [vmem:[#allocation2 + $0x48] sm:$0xff] (%p209_p10), %v1051_v0 }
  0x40   : > { %225 = vst [vmem:[#allocation2 + $0x50] sm:$0xff] (%p209_p10), %v1051_v0  ;;  %226 = vst [vmem:[#allocation2 + $0x58] sm:$0xff] (%p209_p10), %v1051_v0 }
  0x41   : > { %227 = vst [vmem:[#allocation2 + $0x60] sm:$0xff] (%p209_p10), %v1051_v0  ;;  %228 = vst [vmem:[#allocation2 + $0x68] sm:$0xff] (%p209_p10), %v1051_v0 }
  0x42   : > { %229 = vst [vmem:[#allocation2 + $0x70] sm:$0xff] %v1051_v0  ;;  %230 = vst [vmem:[#allocation2 + $0x78] sm:$0xff] %v1051_v0 }
  0x43   : > { %231 = vst [vmem:[#allocation2 + $0x80] sm:$0xff] %v1051_v0  ;;  %232 = vst [vmem:[#allocation2 + $0x88] sm:$0xff] %v1051_v0 }
  0x44   : > { %233 = vst [vmem:[#allocation2 + $0x90] sm:$0xff] %v1051_v0  ;;  %234 = vst [vmem:[#allocation2 + $0x98] sm:$0xff] %v1051_v0 }
  0x45   : > { %235 = vst [vmem:[#allocation2 + $0xa0] sm:$0xff] %v1051_v0  ;;  %236 = vst [vmem:[#allocation2 + $0xa8] sm:$0xff] %v1051_v0 }
  0x46   : > { %237 = vst [vmem:[#allocation2 + $0xb0] sm:$0xff] %v1051_v0  ;;  %238 = vst [vmem:[#allocation2 + $0xb8] sm:$0xff] %v1051_v0 }
  0x47   : > { %239 = vst [vmem:[#allocation2 + $0xc0] sm:$0xff] %v1051_v0  ;;  %240 = vst [vmem:[#allocation2 + $0xc8] sm:$0xff] %v1051_v0 }
  0x48   : > { %241 = vst [vmem:[#allocation2 + $0xd0] sm:$0xff] %v1051_v0  ;;  %242 = vst [vmem:[#allocation2 + $0xd8] sm:$0xff] %v1051_v0 }
  0x49   : > { %243 = vst [vmem:[#allocation2 + $0xe0] sm:$0xff] %v1051_v0  ;;  %244 = vst [vmem:[#allocation2 + $0xe8] sm:$0xff] %v1051_v0 }
  0x4a   : > { %245 = vst [vmem:[#allocation2 + $0xf0] sm:$0xff] %v1051_v0  ;;  %246 = vst [vmem:[#allocation2 + $0xf8] sm:$0xff] %v1051_v0 }
  0x4b   : > { %247 = vst [vmem:[#allocation3] sm:$0xff] %v1051_v0  ;;  %248 = vst [vmem:[#allocation3 + $0x8] sm:$0xff] %v1051_v0 }
  0x4c   : > { %249 = vst [vmem:[#allocation3 + $0x10] sm:$0xff] %v1051_v0  ;;  %250 = vst [vmem:[#allocation3 + $0x18] sm:$0xff] %v1051_v0 }
  0x4d   : > { %251 = vst [vmem:[#allocation3 + $0x20] sm:$0xff] %v1051_v0  ;;  %252 = vst [vmem:[#allocation3 + $0x28] sm:$0xff] %v1051_v0 }
  0x4e   : > { %253 = vst [vmem:[#allocation3 + $0x30] sm:$0xff] %v1051_v0  ;;  %254 = vst [vmem:[#allocation3 + $0x38] sm:$0xff] %v1051_v0 }
  0x4f   : > { %255 = vst [vmem:[#allocation3 + $0x40] sm:$0xff] %v1051_v0  ;;  %256 = vst [vmem:[#allocation3 + $0x48] sm:$0xff] %v1051_v0 }
  0x50   : > { %257 = vst [vmem:[#allocation3 + $0x50] sm:$0xff] %v1051_v0  ;;  %258 = vst [vmem:[#allocation3 + $0x58] sm:$0xff] %v1051_v0 }
  0x51   : > { %259 = vst [vmem:[#allocation3 + $0x60] sm:$0xff] %v1051_v0  ;;  %260 = vst [vmem:[#allocation3 + $0x68] sm:$0xff] %v1051_v0 }
  0x52   : > { %261 = vst [vmem:[#allocation3 + $0x70] sm:$0xff] %v1051_v0  ;;  %262 = vst [vmem:[#allocation3 + $0x78] sm:$0xff] %v1051_v0 }
  0x53   : > { %263 = vst [vmem:[#allocation3 + $0x80] sm:$0xff] %v1051_v0  ;;  %264 = vst [vmem:[#allocation3 + $0x88] sm:$0xff] %v1051_v0 }
  0x54   : > { %265 = vst [vmem:[#allocation3 + $0x90] sm:$0xff] %v1051_v0  ;;  %266 = vst [vmem:[#allocation3 + $0x98] sm:$0xff] %v1051_v0 }
  0x55   : > { %267 = vst [vmem:[#allocation3 + $0xa0] sm:$0xff] %v1051_v0  ;;  %268 = vst [vmem:[#allocation3 + $0xa8] sm:$0xff] %v1051_v0 }
  0x56   : > { %269 = vst [vmem:[#allocation3 + $0xb0] sm:$0xff] %v1051_v0  ;;  %270 = vst [vmem:[#allocation3 + $0xb8] sm:$0xff] %v1051_v0 }
  0x57   : > { %271 = vst [vmem:[#allocation3 + $0xc0] sm:$0xff] %v1051_v0  ;;  %272 = vst [vmem:[#allocation3 + $0xc8] sm:$0xff] %v1051_v0 }
  0x58   : > { %273 = vst [vmem:[#allocation3 + $0xd0] sm:$0xff] %v1051_v0  ;;  %274 = vst [vmem:[#allocation3 + $0xd8] sm:$0xff] %v1051_v0 }
  0x59   : > { %275 = vst [vmem:[#allocation3 + $0xe0] sm:$0xff] %v1051_v0  ;;  %276 = vst [vmem:[#allocation3 + $0xe8] sm:$0xff] %v1051_v0 }
  0x5a   : > { %277 = vst [vmem:[#allocation3 + $0xf0] sm:$0xff] %v1051_v0  ;;  %278 = vst [vmem:[#allocation3 + $0xf8] sm:$0xff] %v1051_v0 }
  0x5b PF: > { %v1268_v1 = vld [vmem:[%s1185_s24] sm:$0xff]  ;;  %v1271_v3 = vld [vmem:[%s1185_s24 + $0x8] sm:$0xff]  ;;  %p535_p7 = scmp.eq.s32.totalorder %s1030_s12, 1  ;;  %v1276_v6 = vld [vmem:[%s1185_s24 + $0x10] sm:$0xff] }
  0x5c   : > { %v311_v2 = vld [vmem:[#allocation2] sm:$0xff]  ;;  %v312_v5 = vld [vmem:[#allocation2 + $0x8] sm:$0xff]  ;;  %v313_v7 = vld [vmem:[#allocation2 + $0x10] sm:$0xff]  ;;  %v1344_v58 = vmul.f32 %v1268_v1, %v1268_v1  ;;  %v1348_v59 = vmul.f32 %v1271_v3, %v1271_v3  ;;  %v1353_v0 = vmul.f32 %v1276_v6, %v1276_v6  ;;  %vm620_vm0 = vcmask (%p535_p7), 7168  }
  0x5d   : > { %v343_v4 = vadd.f32 %v311_v2, %v1268_v1  ;;  %v344_v8 = vadd.f32 %v312_v5, %v1271_v3  ;;  %v345_v9 = vadd.f32 %v313_v7, %v1276_v6  ;;  %v1281_v10 = vld [vmem:[%s1185_s24 + $0x18] sm:$0xff]  ;;  %v1284_v12 = vld [vmem:[%s1185_s24 + $0x20] sm:$0xff]  ;;  %v1288_v15 = vld [vmem:[%s1185_s24 + $0x28] sm:$0xff] }
  0x5e   : > { %v314_v11 = vld [vmem:[#allocation2 + $0x18] sm:$0xff]  ;;  %v315_v14 = vld [vmem:[#allocation2 + $0x20] sm:$0xff]  ;;  %v316_v16 = vld [vmem:[#allocation2 + $0x28] sm:$0xff]  ;;  %v1357_v2 = vmul.f32 %v1281_v10, %v1281_v10  ;;  %v1361_v1 = vmul.f32 %v1284_v12, %v1284_v12  ;;  %v1367_v6 = vmul.f32 %v1288_v15, %v1288_v15 }
  0x5f   : > { %375 = vst [vmem:[#allocation2] sm:$0xff] %v343_v4  ;;  %v346_v13 = vadd.f32 %v314_v11, %v1281_v10  ;;  %376 = vst [vmem:[#allocation2 + $0x8] sm:$0xff] %v344_v8  ;;  %v347_v17 = vadd.f32 %v315_v14, %v1284_v12  ;;  %v348_v18 = vadd.f32 %v316_v16, %v1288_v15  ;;  %v1293_v19 = vld [vmem:[%s1185_s24 + $0x30] sm:$0xff]  ;;  %v1296_v21 = vld [vmem:[%s1185_s24 + $0x38] sm:$0xff] }
  0x60   : > { %377 = vst [vmem:[#allocation2 + $0x10] sm:$0xff] %v345_v9  ;;  %v317_v20 = vld [vmem:[#allocation2 + $0x30] sm:$0xff]  ;;  %v318_v23 = vld [vmem:[#allocation2 + $0x38] sm:$0xff]  ;;  %v1300_v24 = vld [vmem:[%s1185_s24 + $0x40] sm:$0xff]  ;;  %v1371_v9 = vmul.f32 %v1293_v19, %v1293_v19  ;;  %v1376_v14 = vmul.f32 %v1296_v21, %v1296_v21 }
  0x61   : > { %378 = vst [vmem:[#allocation2 + $0x18] sm:$0xff] %v346_v13  ;;  %v349_v22 = vadd.f32 %v317_v20, %v1293_v19  ;;  %v319_v25 = vld [vmem:[#allocation2 + $0x40] sm:$0xff]  ;;  %379 = vst [vmem:[#allocation2 + $0x20] sm:$0xff] %v347_v17  ;;  %v350_v26 = vadd.f32 %v318_v23, %v1296_v21  ;;  %v1305_v28 = vld [vmem:[%s1185_s24 + $0x48] sm:$0xff]  ;;  %v1380_v16 = vmul.f32 %v1300_v24, %v1300_v24 }
  0x62   : > { %380 = vst [vmem:[#allocation2 + $0x28] sm:$0xff] %v348_v18  ;;  %v351_v27 = vadd.f32 %v319_v25, %v1300_v24  ;;  %v320_v29 = vld [vmem:[#allocation2 + $0x48] sm:$0xff]  ;;  %v1308_v30 = vld [vmem:[%s1185_s24 + $0x50] sm:$0xff]  ;;  %v1312_v33 = vld [vmem:[%s1185_s24 + $0x58] sm:$0xff]  ;;  %v1384_v15 = vmul.f32 %v1305_v28, %v1305_v28 }
  0x63   : > { %381 = vst [vmem:[#allocation2 + $0x30] sm:$0xff] %v349_v22  ;;  %v352_v31 = vadd.f32 %v320_v29, %v1305_v28  ;;  %v321_v32 = vld [vmem:[#allocation2 + $0x50] sm:$0xff]  ;;  %v322_v34 = vld [vmem:[#allocation2 + $0x58] sm:$0xff]  ;;  %382 = vst [vmem:[#allocation2 + $0x38] sm:$0xff] %v350_v26  ;;  %v1390_v21 = vmul.f32 %v1308_v30, %v1308_v30  ;;  %v1394_v23 = vmul.f32 %v1312_v33, %v1312_v33 }
  0x64   : > { %383 = vst [vmem:[#allocation2 + $0x40] sm:$0xff] %v351_v27  ;;  %v353_v35 = vadd.f32 %v321_v32, %v1308_v30  ;;  %v354_v36 = vadd.f32 %v322_v34, %v1312_v33  ;;  %v1317_v37 = vld [vmem:[%s1185_s24 + $0x60] sm:$0xff]  ;;  %v1320_v39 = vld [vmem:[%s1185_s24 + $0x68] sm:$0xff]  ;;  %v1324_v42 = vld [vmem:[%s1185_s24 + $0x70] sm:$0xff] }
  0x65   : > { %v323_v38 = vld [vmem:[#allocation2 + $0x60] sm:$0xff]  ;;  %384 = vst [vmem:[#allocation2 + $0x48] sm:$0xff] %v352_v31  ;;  %v324_v41 = vld [vmem:[#allocation2 + $0x68] sm:$0xff]  ;;  %v325_v43 = vld [vmem:[#allocation2 + $0x70] sm:$0xff]  ;;  %v1399_v28 = vmul.f32 %v1317_v37, %v1317_v37  ;;  %v1403_v29 = vmul.f32 %v1320_v39, %v1320_v39  ;;  %v1407_v30 = vmul.f32 %v1324_v42, %v1324_v42 }
  0x66   : > { %v355_v40 = vadd.f32 %v323_v38, %v1317_v37  ;;  %385 = vst [vmem:[#allocation2 + $0x50] sm:$0xff] %v353_v35  ;;  %386 = vst [vmem:[#allocation2 + $0x58] sm:$0xff] %v354_v36  ;;  %v356_v44 = vadd.f32 %v324_v41, %v1320_v39  ;;  %v357_v45 = vadd.f32 %v325_v43, %v1324_v42  ;;  %v1329_v46 = vld [vmem:[%s1185_s24 + $0x78] sm:$0xff]  ;;  %v1332_v48 = vld [vmem:[%s1185_s24 + $0x80] sm:$0xff] }
  0x67   : > { %v326_v47 = vld [vmem:[#allocation2 + $0x78] sm:$0xff]  ;;  %v327_v50 = vld [vmem:[#allocation2 + $0x80] sm:$0xff]  ;;  %v1336_v51 = vld [vmem:[%s1185_s24 + $0x88] sm:$0xff]  ;;  %v1415_v36 = vmul.f32 %v1329_v46, %v1329_v46  ;;  %v1419_v37 = vmul.f32 %v1332_v48, %v1332_v48 }
  0x68   : > { %387 = vst [vmem:[#allocation2 + $0x60] sm:$0xff] %v355_v40  ;;  %v358_v49 = vadd.f32 %v326_v47, %v1329_v46  ;;  %v328_v52 = vld [vmem:[#allocation2 + $0x88] sm:$0xff]  ;;  %388 = vst [vmem:[#allocation2 + $0x68] sm:$0xff] %v356_v44  ;;  %v359_v53 = vadd.f32 %v327_v50, %v1332_v48  ;;  %v297_v55 = vld [vmem:[%s1185_s24 + $0x90] sm:$0xff]  ;;  %v1426_v42 = vmul.f32 %v1336_v51, %v1336_v51 }
  0x69   : > { %389 = vst [vmem:[#allocation2 + $0x70] sm:$0xff] %v357_v45  ;;  %v360_v54 = vadd.f32 %v328_v52, %v1336_v51  ;;  %v329_v56 = vld [vmem:[#allocation2 + $0x90] sm:$0xff]  ;;  %v298_v57 = vld [vmem:[%s1185_s24 + $0x98] sm:$0xff]  ;;  %v299_v62 = vld [vmem:[%s1185_s24 + $0xa0] sm:$0xff]  ;;  %v1428_v43 = vmul.f32 %v297_v55, %v297_v55 }
  0x6a   : > { %390 = vst [vmem:[#allocation2 + $0x78] sm:$0xff] %v358_v49  ;;  %v361_v60 = vadd.f32 %v329_v56, %v297_v55  ;;  %v330_v61 = vld [vmem:[#allocation2 + $0x98] sm:$0xff]  ;;  %v331_v63 = vld [vmem:[#allocation2 + $0xa0] sm:$0xff]  ;;  %391 = vst [vmem:[#allocation2 + $0x80] sm:$0xff] %v359_v53  ;;  %v1430_v44 = vmul.f32 %v298_v57, %v298_v57  ;;  %v1440_v50 = vmul.f32 %v299_v62, %v299_v62 }
  0x6b   : > { %392 = vst [vmem:[#allocation2 + $0x88] sm:$0xff] %v360_v54  ;;  %v362_v3 = vadd.f32 %v330_v61, %v298_v57  ;;  %v363_v4 = vadd.f32 %v331_v63, %v299_v62  ;;  %v300_v5 = vld [vmem:[%s1185_s24 + $0xa8] sm:$0xff]  ;;  %v301_v8 = vld [vmem:[%s1185_s24 + $0xb0] sm:$0xff]  ;;  %v302_v12 = vld [vmem:[%s1185_s24 + $0xb8] sm:$0xff] }
  0x6c   : > { %v332_v7 = vld [vmem:[#allocation2 + $0xa8] sm:$0xff]  ;;  %393 = vst [vmem:[#allocation2 + $0x90] sm:$0xff] %v361_v60  ;;  %v333_v11 = vld [vmem:[#allocation2 + $0xb0] sm:$0xff]  ;;  %v334_v13 = vld [vmem:[#allocation2 + $0xb8] sm:$0xff]  ;;  %v1442_v52 = vmul.f32 %v300_v5, %v300_v5  ;;  %v1445_v56 = vmul.f32 %v301_v8, %v301_v8  ;;  %v1447_v57 = vmul.f32 %v302_v12, %v302_v12 }
  0x6d   : > { %v364_v10 = vadd.f32 %v332_v7, %v300_v5  ;;  %394 = vst [vmem:[#allocation2 + $0x98] sm:$0xff] %v362_v3  ;;  %395 = vst [vmem:[#allocation2 + $0xa0] sm:$0xff] %v363_v4  ;;  %v365_v17 = vadd.f32 %v333_v11, %v301_v8  ;;  %v366_v18 = vadd.f32 %v334_v13, %v302_v12  ;;  %v303_v19 = vld [vmem:[%s1185_s24 + $0xc0] sm:$0xff]  ;;  %v304_v22 = vld [vmem:[%s1185_s24 + $0xc8] sm:$0xff] }
  0x6e   : > { %v335_v20 = vld [vmem:[#allocation2 + $0xc0] sm:$0xff]  ;;  %v336_v25 = vld [vmem:[#allocation2 + $0xc8] sm:$0xff]  ;;  %v305_v26 = vld [vmem:[%s1185_s24 + $0xd0] sm:$0xff]  ;;  %v1449_v60 = vmul.f32 %v303_v19, %v303_v19  ;;  %v1454_v7 = vmul.f32 %v304_v22, %v304_v22 }
  0x6f   : > { %396 = vst [vmem:[#allocation2 + $0xa8] sm:$0xff] %v364_v10  ;;  %v367_v24 = vadd.f32 %v335_v20, %v303_v19  ;;  %v337_v27 = vld [vmem:[#allocation2 + $0xd0] sm:$0xff]  ;;  %397 = vst [vmem:[#allocation2 + $0xb0] sm:$0xff] %v365_v17  ;;  %v368_v31 = vadd.f32 %v336_v25, %v304_v22  ;;  %v306_v33 = vld [vmem:[%s1185_s24 + $0xd8] sm:$0xff] }
  0x70   : > { %398 = vst [vmem:[#allocation2 + $0xb8] sm:$0xff] %v366_v18  ;;  %v369_v32 = vadd.f32 %v337_v27, %v305_v26  ;;  %v338_v34 = vld [vmem:[#allocation2 + $0xd8] sm:$0xff]  ;;  %v1411_v35 = vld [vmem:[%s1185_s24 + $0xe0] sm:$0xff]  ;;  %v1422_v40 = vld [vmem:[%s1185_s24 + $0xe8] sm:$0xff]  ;;  %v1459_v18 = vmul.f32 %v305_v26, %v305_v26 }
  0x71   : > { %399 = vst [vmem:[#allocation2 + $0xc0] sm:$0xff] %v367_v24  ;;  %v370_v38 = vadd.f32 %v338_v34, %v306_v33  ;;  %v339_v39 = vld [vmem:[#allocation2 + $0xe0] sm:$0xff]  ;;  %v340_v41 = vld [vmem:[#allocation2 + $0xe8] sm:$0xff]  ;;  %400 = vst [vmem:[#allocation2 + $0xc8] sm:$0xff] %v368_v31 }
  0x72   : > { %401 = vst [vmem:[#allocation2 + $0xd0] sm:$0xff] %v369_v32  ;;  %v371_v45 = vadd.f32 %v339_v39, %v1411_v35  ;;  %v372_v46 = vadd.f32 %v340_v41, %v1422_v40  ;;  %v1435_v47 = vld [vmem:[%s1185_s24 + $0xf0] sm:$0xff]  ;;  %v1438_v49 = vld [vmem:[%s1185_s24 + $0xf8] sm:$0xff]  ;;  %v407_v54 = vld [vmem:[#allocation3] sm:$0xff] }
  0x73   : > { %v341_v48 = vld [vmem:[#allocation2 + $0xf0] sm:$0xff]  ;;  %402 = vst [vmem:[#allocation2 + $0xd8] sm:$0xff] %v370_v38  ;;  %v342_v53 = vld [vmem:[#allocation2 + $0xf8] sm:$0xff]  ;;  %v408_v55 = vld [vmem:[#allocation3 + $0x8] sm:$0xff]  ;;  %v471_v62 = vadd.f32 %v1344_v58, %v407_v54 }
  0x74   : > { %v373_v51 = vadd.f32 %v341_v48, %v1435_v47  ;;  %403 = vst [vmem:[#allocation2 + $0xe0] sm:$0xff] %v371_v45  ;;  %404 = vst [vmem:[#allocation2 + $0xe8] sm:$0xff] %v372_v46  ;;  %v374_v61 = vadd.f32 %v342_v53, %v1438_v49  ;;  %v472_v63 = vadd.f32 %v1348_v59, %v408_v55  ;;  %v409_v3 = vld [vmem:[#allocation3 + $0x10] sm:$0xff]  ;;  %v410_v4 = vld [vmem:[#allocation3 + $0x18] sm:$0xff] }
  0x75   : > { %v411_v5 = vld [vmem:[#allocation3 + $0x20] sm:$0xff]  ;;  %v473_v8 = vadd.f32 %v1353_v0, %v409_v3  ;;  %v474_v10 = vadd.f32 %v1357_v2, %v410_v4  ;;  %v412_v12 = vld [vmem:[#allocation3 + $0x28] sm:$0xff]  ;;  %v413_v13 = vld [vmem:[#allocation3 + $0x30] sm:$0xff]  ;;  %503 = vst [vmem:[#allocation3] sm:$0xff] %v471_v62  ;;  %v1464_v2 = vmul.f32 %v306_v33, %v306_v33 }
  0x76   : > { %405 = vst [vmem:[#allocation2 + $0xf0] sm:$0xff] %v373_v51  ;;  %v475_v11 = vadd.f32 %v1361_v1, %v411_v5  ;;  %v414_v17 = vld [vmem:[#allocation3 + $0x38] sm:$0xff]  ;;  %406 = vst [vmem:[#allocation2 + $0xf8] sm:$0xff] %v374_v61  ;;  %v476_v58 = vadd.f32 %v1367_v6, %v412_v12  ;;  %v477_v59 = vadd.f32 %v1371_v9, %v413_v13  ;;  %v415_v20 = vld [vmem:[#allocation3 + $0x40] sm:$0xff] }
  0x77   : > { %504 = vst [vmem:[#allocation3 + $0x8] sm:$0xff] %v472_v63  ;;  %v478_v19 = vadd.f32 %v1376_v14, %v414_v17  ;;  %v416_v0 = vld [vmem:[#allocation3 + $0x48] sm:$0xff]  ;;  %v417_v22 = vld [vmem:[#allocation3 + $0x50] sm:$0xff]  ;;  %505 = vst [vmem:[#allocation3 + $0x10] sm:$0xff] %v473_v8  ;;  %v479_v1 = vadd.f32 %v1380_v16, %v415_v20  ;;  %v467_v9 = vmul.f32 %v1411_v35, %v1411_v35 }
  0x78   : > { %506 = vst [vmem:[#allocation3 + $0x18] sm:$0xff] %v474_v10  ;;  %507 = vst [vmem:[#allocation3 + $0x20] sm:$0xff] %v475_v11  ;;  %v480_v24 = vadd.f32 %v1384_v15, %v416_v0  ;;  %v481_v25 = vadd.f32 %v1390_v21, %v417_v22  ;;  %v418_v26 = vld [vmem:[#allocation3 + $0x58] sm:$0xff]  ;;  %v419_v6 = vld [vmem:[#allocation3 + $0x60] sm:$0xff]  ;;  %v468_v21 = vmul.f32 %v1422_v40, %v1422_v40 }
  0x79   : > { %v420_v27 = vld [vmem:[#allocation3 + $0x68] sm:$0xff]  ;;  %508 = vst [vmem:[#allocation3 + $0x28] sm:$0xff] %v476_v58  ;;  %509 = vst [vmem:[#allocation3 + $0x30] sm:$0xff] %v477_v59  ;;  %v482_v14 = vadd.f32 %v1394_v23, %v418_v26  ;;  %v483_v31 = vadd.f32 %v1399_v28, %v419_v6  ;;  %v421_v16 = vld [vmem:[#allocation3 + $0x70] sm:$0xff] }
  0x7a   : > { %510 = vst [vmem:[#allocation3 + $0x38] sm:$0xff] %v478_v19  ;;  %v484_v32 = vadd.f32 %v1403_v29, %v420_v27  ;;  %v422_v33 = vld [vmem:[#allocation3 + $0x78] sm:$0xff]  ;;  %v423_v15 = vld [vmem:[#allocation3 + $0x80] sm:$0xff]  ;;  %511 = vst [vmem:[#allocation3 + $0x40] sm:$0xff] %v479_v1  ;;  %v485_v34 = vadd.f32 %v1407_v30, %v421_v16  ;;  %v469_v29 = vmul.f32 %v1435_v47, %v1435_v47 }
  0x7b   : > { %512 = vst [vmem:[#allocation3 + $0x48] sm:$0xff] %v480_v24  ;;  %513 = vst [vmem:[#allocation3 + $0x50] sm:$0xff] %v481_v25  ;;  %v486_v35 = vadd.f32 %v1415_v36, %v422_v33  ;;  %v487_v38 = vadd.f32 %v1419_v37, %v423_v15  ;;  %v424_v23 = vld [vmem:[#allocation3 + $0x88] sm:$0xff]  ;;  %v425_v39 = vld [vmem:[#allocation3 + $0x90] sm:$0xff]  ;;  %v470_v37 = vmul.f32 %v1438_v49, %v1438_v49 }
  0x7c   : > { %v426_v28 = vld [vmem:[#allocation3 + $0x98] sm:$0xff]  ;;  %514 = vst [vmem:[#allocation3 + $0x58] sm:$0xff] %v482_v14  ;;  %515 = vst [vmem:[#allocation3 + $0x60] sm:$0xff] %v483_v31  ;;  %v488_v40 = vadd.f32 %v1426_v42, %v424_v23  ;;  %v489_v41 = vadd.f32 %v1428_v43, %v425_v39  ;;  %v427_v30 = vld [vmem:[#allocation3 + $0xa0] sm:$0xff] }
  0x7d   : > { %516 = vst [vmem:[#allocation3 + $0x68] sm:$0xff] %v484_v32  ;;  %v490_v45 = vadd.f32 %v1430_v44, %v426_v28  ;;  %v428_v46 = vld [vmem:[#allocation3 + $0xa8] sm:$0xff]  ;;  %v429_v36 = vld [vmem:[#allocation3 + $0xb0] sm:$0xff]  ;;  %517 = vst [vmem:[#allocation3 + $0x70] sm:$0xff] %v485_v34  ;;  %v491_v47 = vadd.f32 %v1440_v50, %v427_v30 }
  0x7e   : > { %518 = vst [vmem:[#allocation3 + $0x78] sm:$0xff] %v486_v35  ;;  %519 = vst [vmem:[#allocation3 + $0x80] sm:$0xff] %v487_v38  ;;  %v492_v48 = vadd.f32 %v1442_v52, %v428_v46  ;;  %v493_v51 = vadd.f32 %v1445_v56, %v429_v36  ;;  %v430_v42 = vld [vmem:[#allocation3 + $0xb8] sm:$0xff]  ;;  %v431_v53 = vld [vmem:[#allocation3 + $0xc0] sm:$0xff] }
  0x7f   : > { %v432_v43 = vld [vmem:[#allocation3 + $0xc8] sm:$0xff]  ;;  %520 = vst [vmem:[#allocation3 + $0x88] sm:$0xff] %v488_v40  ;;  %521 = vst [vmem:[#allocation3 + $0x90] sm:$0xff] %v489_v41  ;;  %v494_v44 = vadd.f32 %v1447_v57, %v430_v42  ;;  %v495_v54 = vadd.f32 %v1449_v60, %v431_v53  ;;  %v433_v55 = vld [vmem:[#allocation3 + $0xd0] sm:$0xff] }
  0x80   : > { %522 = vst [vmem:[#allocation3 + $0x98] sm:$0xff] %v490_v45  ;;  %v496_v49 = vadd.f32 %v1454_v7, %v432_v43  ;;  %v434_v61 = vld [vmem:[#allocation3 + $0xd8] sm:$0xff]  ;;  %v435_v62 = vld [vmem:[#allocation3 + $0xe0] sm:$0xff]  ;;  %523 = vst [vmem:[#allocation3 + $0xa0] sm:$0xff] %v491_v47  ;;  %v497_v50 = vadd.f32 %v1459_v18, %v433_v55  ;;  %539 = sbr.rel (!%p535_p7) target bundleno = 338 (0x152), region = 36 }
  0x81   : > { %524 = vst [vmem:[#allocation3 + $0xa8] sm:$0xff] %v492_v48  ;;  %525 = vst [vmem:[#allocation3 + $0xb0] sm:$0xff] %v493_v51  ;;  %v498_v52 = vadd.f32 %v1464_v2, %v434_v61  ;;  %v499_v56 = vadd.f32 %v467_v9, %v435_v62  ;;  %v436_v63 = vld [vmem:[#allocation3 + $0xe8] sm:$0xff]  ;;  %v437_v3 = vld [vmem:[#allocation3 + $0xf0] sm:$0xff] }
  0x82   : > { %v438_v4 = vld [vmem:[#allocation3 + $0xf8] sm:$0xff]  ;;  %526 = vst [vmem:[#allocation3 + $0xb8] sm:$0xff] %v494_v44  ;;  %527 = vst [vmem:[#allocation3 + $0xc0] sm:$0xff] %v495_v54  ;;  %v500_v57 = vadd.f32 %v468_v21, %v436_v63  ;;  %v501_v60 = vadd.f32 %v469_v29, %v437_v3  ;;  %v544_v7 = vld [vmem:[#allocation2 + $0x20] sm:$0xff] (%p535_p7) }
  0x83   : > { %528 = vst [vmem:[#allocation3 + $0xc8] sm:$0xff] %v496_v49  ;;  %v502_v5 = vadd.f32 %v470_v37, %v438_v4  ;;  %529 = vst [vmem:[#allocation3 + $0xd0] sm:$0xff] %v497_v50  ;;  %v545_v8 = vld [vmem:[#allocation2 + $0x28] sm:$0xff] (%p535_p7)  ;;  %v540_v10 = vld [vmem:[#allocation2] sm:$0xff] (%p535_p7) }
  0x84   : > { %530 = vst [vmem:[#allocation3 + $0xd8] sm:$0xff] %v498_v52  ;;  %531 = vst [vmem:[#allocation3 + $0xe0] sm:$0xff] %v499_v56  ;;  %v578_v11 = vadd.f32 (%p535_p7), %v545_v8, %v544_v7  ;;  %v541_v12 = vld [vmem:[#allocation2 + $0x8] sm:$0xff] (%p535_p7)  ;;  %v546_v13 = vld [vmem:[#allocation2 + $0x30] sm:$0xff] (%p535_p7) }
  0x85   : > { %532 = vst [vmem:[#allocation3 + $0xe8] sm:$0xff] %v500_v57  ;;  %533 = vst [vmem:[#allocation3 + $0xf0] sm:$0xff] %v501_v60  ;;  %v547_v17 = vld [vmem:[#allocation2 + $0x38] sm:$0xff] (%p535_p7)  ;;  %v572_v18 = vadd.f32 (%p535_p7), %v541_v12, %v540_v10  ;;  %v542_v58 = vld [vmem:[#allocation2 + $0x10] sm:$0xff] (%p535_p7) }
  0x86   : > { %534 = vst [vmem:[#allocation3 + $0xf8] sm:$0xff] %v502_v5  ;;  %v543_v59 = vld [vmem:[#allocation2 + $0x18] sm:$0xff] (%p535_p7)  ;;  %579 = vadd.xlane.f32.xlu1 (%p535_p7), %v578_v11  ;;  %v581_v19 = vadd.f32 (%p535_p7), %v547_v17, %v546_v13  ;;  %v550_v0 = vld [vmem:[#allocation2 + $0x50] sm:$0xff] (%p535_p7)  ;;  %v548_v2 = vld [vmem:[#allocation2 + $0x40] sm:$0xff] (%p535_p7) }
  0x87   : > { %573 = vadd.xlane.f32.xlu0 %v572_v18  ;;  %v575_v20 = vadd.f32 %v543_v59, %v542_v58  ;;  %v551_v22 = vld [vmem:[#allocation2 + $0x58] sm:$0xff]  ;;  %v549_v1 = vld [vmem:[#allocation2 + $0x48] sm:$0xff]  ;;  %v554_v26 = vld [vmem:[#allocation2 + $0x70] sm:$0xff] }
  0x88   : > { %v587_v24 = vadd.f32 %v551_v22, %v550_v0  ;;  %v584_v25 = vadd.f32 %v549_v1, %v548_v2  ;;  %v555_v6 = vld [vmem:[#allocation2 + $0x78] sm:$0xff]  ;;  %v552_v27 = vld [vmem:[#allocation2 + $0x60] sm:$0xff]  ;;  %v553_v9 = vld [vmem:[#allocation2 + $0x68] sm:$0xff] }
  0x89   : > { %v593_v14 = vadd.f32 %v555_v6, %v554_v26  ;;  %v590_v31 = vadd.f32 %v553_v9, %v552_v27  ;;  %v558_v32 = vld [vmem:[#allocation2 + $0x90] sm:$0xff]  ;;  %v559_v16 = vld [vmem:[#allocation2 + $0x98] sm:$0xff]  ;;  %v556_v33 = vld [vmem:[#allocation2 + $0x80] sm:$0xff] }
  0x8a   : > { %582 = vadd.xlane.f32.xlu1 %v581_v19  ;;  %v557_v15 = vld [vmem:[#allocation2 + $0x88] sm:$0xff]  ;;  %v599_v21 = vadd.f32 %v559_v16, %v558_v32  ;;  %v562_v35 = vld [vmem:[#allocation2 + $0xb0] sm:$0xff]  ;;  %v563_v38 = vld [vmem:[#allocation2 + $0xb8] sm:$0xff] }
  0x8b   : > { %576 = vadd.xlane.f32.xlu0 %v575_v20  ;;  %v596_v34 = vadd.f32 %v557_v15, %v556_v33  ;;  %v560_v23 = vld [vmem:[#allocation2 + $0xa0] sm:$0xff]  ;;  %v561_v39 = vld [vmem:[#allocation2 + $0xa8] sm:$0xff]  ;;  %v605_v28 = vadd.f32 %v563_v38, %v562_v35  ;;  %v566_v40 = vld [vmem:[#allocation2 + $0xd0] sm:$0xff] }
  0x8c   : > { %v602_v29 = vadd.f32 %v561_v39, %v560_v23  ;;  %v567_v41 = vld [vmem:[#allocation2 + $0xd8] sm:$0xff]  ;;  %v564_v45 = vld [vmem:[#allocation2 + $0xc0] sm:$0xff]  ;;  %v565_v30 = vld [vmem:[#allocation2 + $0xc8] sm:$0xff] }
  0x8d   : > { %v611_v46 = vadd.f32 %v567_v41, %v566_v40  ;;  %v608_v36 = vadd.f32 %v565_v30, %v564_v45  ;;  %v570_v37 = vld [vmem:[#allocation2 + $0xf0] sm:$0xff]  ;;  %v571_v47 = vld [vmem:[#allocation2 + $0xf8] sm:$0xff]  ;;  %v568_v48 = vld [vmem:[#allocation2 + $0xe0] sm:$0xff] }
  0x8e   : > { %588 = vadd.xlane.f32.xlu1 %v587_v24  ;;  %v569_v51 = vld [vmem:[#allocation2 + $0xe8] sm:$0xff]  ;;  %v617_v42 = vadd.f32 %v571_v47, %v570_v37  ;;  %v639_v43 = vld [vmem:[#allocation3 + $0x10] sm:$0xff]  ;;  %v640_v44 = vld [vmem:[#allocation3 + $0x18] sm:$0xff] }
  0x8f   : > { %585 = vadd.xlane.f32.xlu0 %v584_v25  ;;  %v614_v53 = vadd.f32 %v569_v51, %v568_v48  ;;  %v637_v54 = vld [vmem:[#allocation3] sm:$0xff]  ;;  %v638_v49 = vld [vmem:[#allocation3 + $0x8] sm:$0xff]  ;;  %v672_v55 = vadd.f32 %v640_v44, %v639_v43  ;;  %v643_v62 = vld [vmem:[#allocation3 + $0x30] sm:$0xff] }
  0x90   : > { %v669_v61 = vadd.f32 %v638_v49, %v637_v54  ;;  %v644_v50 = vld [vmem:[#allocation3 + $0x38] sm:$0xff]  ;;  %v641_v52 = vld [vmem:[#allocation3 + $0x20] sm:$0xff]  ;;  %v642_v56 = vld [vmem:[#allocation3 + $0x28] sm:$0xff] }
  0x91   : > { %v678_v63 = vadd.f32 %v644_v50, %v643_v62  ;;  %v675_v3 = vadd.f32 %v642_v56, %v641_v52  ;;  %v647_v4 = vld [vmem:[#allocation3 + $0x50] sm:$0xff]  ;;  %v648_v57 = vld [vmem:[#allocation3 + $0x58] sm:$0xff]  ;;  %v645_v60 = vld [vmem:[#allocation3 + $0x40] sm:$0xff] }
  0x92   : > { %594 = vadd.xlane.f32.xlu1 %v593_v14  ;;  %v646_v5 = vld [vmem:[#allocation3 + $0x48] sm:$0xff]  ;;  %v684_v7 = vadd.f32 %v648_v57, %v647_v4  ;;  %v651_v10 = vld [vmem:[#allocation3 + $0x70] sm:$0xff]  ;;  %v652_v11 = vld [vmem:[#allocation3 + $0x78] sm:$0xff] }
  0x93   : > { %591 = vadd.xlane.f32.xlu0 %v590_v31  ;;  %v681_v8 = vadd.f32 %v646_v5, %v645_v60  ;;  %v649_v12 = vld [vmem:[#allocation3 + $0x60] sm:$0xff]  ;;  %v650_v13 = vld [vmem:[#allocation3 + $0x68] sm:$0xff]  ;;  %v690_v17 = vadd.f32 %v652_v11, %v651_v10  ;;  %v655_v58 = vld [vmem:[#allocation3 + $0x90] sm:$0xff] }
  0x94   : > { %v687_v18 = vadd.f32 %v650_v13, %v649_v12  ;;  %v656_v59 = vld [vmem:[#allocation3 + $0x98] sm:$0xff]  ;;  %v653_v19 = vld [vmem:[#allocation3 + $0x80] sm:$0xff]  ;;  %v654_v20 = vld [vmem:[#allocation3 + $0x88] sm:$0xff] }
  0x95   : > { %v696_v0 = vadd.f32 %v656_v59, %v655_v58  ;;  %v693_v22 = vadd.f32 %v654_v20, %v653_v19  ;;  %v659_v2 = vld [vmem:[#allocation3 + $0xb0] sm:$0xff]  ;;  %v660_v1 = vld [vmem:[#allocation3 + $0xb8] sm:$0xff]  ;;  %v657_v24 = vld [vmem:[#allocation3 + $0xa0] sm:$0xff] }
  0x96   : > { %600 = vadd.xlane.f32.xlu1 %v599_v21  ;;  %v658_v25 = vld [vmem:[#allocation3 + $0xa8] sm:$0xff]  ;;  %v702_v26 = vadd.f32 %v660_v1, %v659_v2  ;;  %v663_v27 = vld [vmem:[#allocation3 + $0xd0] sm:$0xff]  ;;  %v664_v9 = vld [vmem:[#allocation3 + $0xd8] sm:$0xff] }
  0x97   : > { %597 = vadd.xlane.f32.xlu0 %v596_v34  ;;  %v699_v6 = vadd.f32 %v658_v25, %v657_v24  ;;  %v661_v14 = vld [vmem:[#allocation3 + $0xc0] sm:$0xff]  ;;  %v662_v31 = vld [vmem:[#allocation3 + $0xc8] sm:$0xff]  ;;  %v708_v32 = vadd.f32 %v664_v9, %v663_v27  ;;  %v667_v33 = vld [vmem:[#allocation3 + $0xf0] sm:$0xff] }
  0x98   : > { %v705_v16 = vadd.f32 %v662_v31, %v661_v14  ;;  %v668_v15 = vld [vmem:[#allocation3 + $0xf8] sm:$0xff]  ;;  %v665_v21 = vld [vmem:[#allocation3 + $0xe0] sm:$0xff]  ;;  %v666_v34 = vld [vmem:[#allocation3 + $0xe8] sm:$0xff] }
  0x99   : > { %v714_v35 = vadd.f32 %v668_v15, %v667_v33  ;;  %v711_v38 = vadd.f32 %v666_v34, %v665_v21 }
  0x9a   : > { %606 = vadd.xlane.f32.xlu1 %v605_v28 }
  0x9b   : > { %603 = vadd.xlane.f32.xlu0 %v602_v29 }
  0x9e   : > { %612 = vadd.xlane.f32.xlu1 %v611_v46 }
  0x9f   : > { %609 = vadd.xlane.f32.xlu0 %v608_v36 }
  0xa2   : > { %618 = vadd.xlane.f32.xlu1 %v617_v42 }
  0xa3   : > { %615 = vadd.xlane.f32.xlu0 %v614_v53 }
  0xa6   : > { %673 = vadd.xlane.f32.xlu1 %v672_v55 }
  0xa7   : > { %670 = vadd.xlane.f32.xlu0 %v669_v61 }
  0xaa   : > { %679 = vadd.xlane.f32.xlu1 %v678_v63 }
  0xab   : > { %676 = vadd.xlane.f32.xlu0 %v675_v3 }
  0xae   : > { %685 = vadd.xlane.f32.xlu1 %v684_v7 }
  0xaf   : > { %682 = vadd.xlane.f32.xlu0 %v681_v8 }
  0xb2   : > { %691 = vadd.xlane.f32.xlu1 %v690_v17 }
  0xb3   : > { %688 = vadd.xlane.f32.xlu0 %v687_v18 }
  0xb6   : > { %697 = vadd.xlane.f32.xlu1 %v696_v0 }
  0xb7   : > { %694 = vadd.xlane.f32.xlu0 %v693_v22 }
  0xba   : > { %703 = vadd.xlane.f32.xlu1 %v702_v26 }
  0xbb   : > { %700 = vadd.xlane.f32.xlu0 %v699_v6 }
  0xbe   : > { %709 = vadd.xlane.f32.xlu1 %v708_v32 }
  0xbf   : > { %706 = vadd.xlane.f32.xlu0 %v705_v16 }
  0xc2   : > { %715 = vadd.xlane.f32.xlu1 %v714_v35 }
  0xc3   : > { %712 = vadd.xlane.f32.xlu0 %v711_v38 }
 0x113   : > { %v580_v23 = vpop.xlane.xlu1 %579 }
 0x114   : > { %623 = vst.msk [vmem:[%s1196_s25 + $0x10] sm:$0xff] %vm620_vm0, %v580_v23  ;;  %v574_v39 = vpop.xlane.xlu0 %573 }
 0x115   : > { %621 = vst.msk [vmem:[%s1196_s25] sm:$0xff] %vm620_vm0, %v574_v39 }
 0x117   : > { %v583_v28 = vpop.xlane.xlu1 %582 }
 0x118   : > { %624 = vst.msk [vmem:[%s1196_s25 + $0x18] sm:$0xff] %vm620_vm0, %v583_v28  ;;  %v577_v29 = vpop.xlane.xlu0 %576 }
 0x119   : > { %622 = vst.msk [vmem:[%s1196_s25 + $0x8] sm:$0xff] %vm620_vm0, %v577_v29 }
 0x11b   : > { %v589_v40 = vpop.xlane.xlu1 %588 }
 0x11c   : > { %626 = vst.msk [vmem:[%s1196_s25 + $0x28] sm:$0xff] %vm620_vm0, %v589_v40  ;;  %v586_v41 = vpop.xlane.xlu0 %585 }
 0x11d   : > { %625 = vst.msk [vmem:[%s1196_s25 + $0x20] sm:$0xff] %vm620_vm0, %v586_v41 }
 0x11f   : > { %v595_v45 = vpop.xlane.xlu1 %594 }
 0x120   : > { %628 = vst.msk [vmem:[%s1196_s25 + $0x38] sm:$0xff] %vm620_vm0, %v595_v45  ;;  %v592_v30 = vpop.xlane.xlu0 %591 }
 0x121   : > { %627 = vst.msk [vmem:[%s1196_s25 + $0x30] sm:$0xff] %vm620_vm0, %v592_v30 }
 0x123   : > { %v601_v46 = vpop.xlane.xlu1 %600 }
 0x124   : > { %630 = vst.msk [vmem:[%s1196_s25 + $0x48] sm:$0xff] %vm620_vm0, %v601_v46  ;;  %v598_v36 = vpop.xlane.xlu0 %597 }
 0x125   : > { %629 = vst.msk [vmem:[%s1196_s25 + $0x40] sm:$0xff] %vm620_vm0, %v598_v36 }
 0x127   : > { %v607_v37 = vpop.xlane.xlu1 %606 }
 0x128   : > { %632 = vst.msk [vmem:[%s1196_s25 + $0x58] sm:$0xff] %vm620_vm0, %v607_v37  ;;  %v604_v47 = vpop.xlane.xlu0 %603 }
 0x129   : > { %631 = vst.msk [vmem:[%s1196_s25 + $0x50] sm:$0xff] %vm620_vm0, %v604_v47 }
 0x12b   : > { %v613_v48 = vpop.xlane.xlu1 %612 }
 0x12c   : > { %634 = vst.msk [vmem:[%s1196_s25 + $0x68] sm:$0xff] %vm620_vm0, %v613_v48  ;;  %v610_v51 = vpop.xlane.xlu0 %609 }
 0x12d   : > { %633 = vst.msk [vmem:[%s1196_s25 + $0x60] sm:$0xff] %vm620_vm0, %v610_v51 }
 0x12f   : > { %v619_v42 = vpop.xlane.xlu1 %618 }
 0x130   : > { %636 = vst.msk [vmem:[%s1196_s25 + $0x78] sm:$0xff] %vm620_vm0, %v619_v42  ;;  %v616_v53 = vpop.xlane.xlu0 %615 }
 0x131   : > { %635 = vst.msk [vmem:[%s1196_s25 + $0x70] sm:$0xff] %vm620_vm0, %v616_v53 }
 0x133   : > { %v674_v43 = vpop.xlane.xlu1 %673 }
 0x134   : > { %718 = vst.msk [vmem:[%s1201_s26 + $0x8] sm:$0xff] %vm620_vm0, %v674_v43  ;;  %v671_v44 = vpop.xlane.xlu0 %670 }
 0x135   : > { %717 = vst.msk [vmem:[%s1201_s26] sm:$0xff] %vm620_vm0, %v671_v44 }
 0x137   : > { %v680_v54 = vpop.xlane.xlu1 %679 }
 0x138   : > { %720 = vst.msk [vmem:[%s1201_s26 + $0x18] sm:$0xff] %vm620_vm0, %v680_v54  ;;  %v677_v49 = vpop.xlane.xlu0 %676 }
 0x139   : > { %719 = vst.msk [vmem:[%s1201_s26 + $0x10] sm:$0xff] %vm620_vm0, %v677_v49 }
 0x13b   : > { %v686_v55 = vpop.xlane.xlu1 %685 }
 0x13c   : > { %722 = vst.msk [vmem:[%s1201_s26 + $0x28] sm:$0xff] %vm620_vm0, %v686_v55  ;;  %v683_v61 = vpop.xlane.xlu0 %682 }
 0x13d   : > { %721 = vst.msk [vmem:[%s1201_s26 + $0x20] sm:$0xff] %vm620_vm0, %v683_v61 }
 0x13f   : > { %v692_v62 = vpop.xlane.xlu1 %691 }
 0x140   : > { %724 = vst.msk [vmem:[%s1201_s26 + $0x38] sm:$0xff] %vm620_vm0, %v692_v62  ;;  %v689_v50 = vpop.xlane.xlu0 %688 }
 0x141   : > { %723 = vst.msk [vmem:[%s1201_s26 + $0x30] sm:$0xff] %vm620_vm0, %v689_v50 }
 0x143   : > { %v698_v52 = vpop.xlane.xlu1 %697 }
 0x144   : > { %726 = vst.msk [vmem:[%s1201_s26 + $0x48] sm:$0xff] %vm620_vm0, %v698_v52  ;;  %v695_v56 = vpop.xlane.xlu0 %694 }
 0x145   : > { %725 = vst.msk [vmem:[%s1201_s26 + $0x40] sm:$0xff] %vm620_vm0, %v695_v56 }
 0x147   : > { %v704_v63 = vpop.xlane.xlu1 %703 }
 0x148   : > { %728 = vst.msk [vmem:[%s1201_s26 + $0x58] sm:$0xff] %vm620_vm0, %v704_v63  ;;  %v701_v3 = vpop.xlane.xlu0 %700 }
 0x149   : > { %727 = vst.msk [vmem:[%s1201_s26 + $0x50] sm:$0xff] %vm620_vm0, %v701_v3 }
 0x14b   : > { %v710_v4 = vpop.xlane.xlu1 %709 }
 0x14c   : > { %730 = vst.msk [vmem:[%s1201_s26 + $0x68] sm:$0xff] %vm620_vm0, %v710_v4  ;;  %v707_v57 = vpop.xlane.xlu0 %706 }
 0x14d   : > { %729 = vst.msk [vmem:[%s1201_s26 + $0x60] sm:$0xff] %vm620_vm0, %v707_v57 }
 0x14f   : > { %v716_v60 = vpop.xlane.xlu1 %715 }
 0x150   : > { %732 = vst.msk [vmem:[%s1201_s26 + $0x78] sm:$0xff] %vm620_vm0, %v716_v60  ;;  %v713_v5 = vpop.xlane.xlu0 %712 }
 0x151   : > { %731 = vst.msk [vmem:[%s1201_s26 + $0x70] sm:$0xff] %vm620_vm0, %v713_v5 }
 0x152 PF: > { %s16_s16 = sadd.s32 1, %s1046_s16   ;;  %s1591_s9 = smov %s1022_s10 }
 0x153   : > { %p13_p6 = scmp.ge.s32.totalorder %s16_s16, 6   ;;  %s1592_s10 = smov %s1026_s11 }
 0x154   : > { %s1593_s11 = smov %s1134_s29  ;;  %s1594_s12 = smov %s1038_s14 }
 0x155   : > { %s1595_s13 = smov %s1042_s15  ;;  %s1596_s14 = smov %s1599_s18 }
 0x156   : > { %s1597_s15 = smov %s1603_s19  ;;  %15 = sbr.rel (!%p13_p6) target bundleno = 5 (0x5), region = 84 }
 0x15d   :  { %772 = vsyncpa [#allocation5], 1 }
 0x15e   :  { %774 = vsyncpa [#allocation5 + $0x1], 1 }

</bundles_post_ra>
